<compile_context>
chip_gen: v7x
topology: tpu7x:2x2x1
jax: 0.10.0
libtpu: 0.0.40
codegen_flags: <defaults>
</compile_context>

<pallas_src>
import jax
import jax.numpy as jnp
from jax.experimental import pallas as pl
from jax.experimental.pallas import tpu as pltpu


def _round_up(a, b):
    return ((a + b - 1) // b) * b


def _vmem_capacity_bytes():
    """Physical VMEM per TensorCore; conservative (v7x) fallback if unknown."""
    try:
        return int(pltpu.get_tpu_info().vmem_capacity_bytes)
    except Exception:
        return 64 * 1024 * 1024


def _pick_tile_rows(m_rows, lane_width, vmem_cap):
    """Rows per x tile, sized by lane-padded bytes against a per-generation
    VMEM budget (3/8 of physical VMEM for the two x buffers)."""
    bytes_per_row = _round_up(lane_width, 128) * 4
    budget = (vmem_cap * 3) // 8               # bytes for the 2 x-tile buffers
    rows = budget // (2 * bytes_per_row)
    rows = max(128, (rows // 128) * 128)       # lane-dense output stores
    # TODO(synk): for extreme H (2*128*round_up(H,128)*4 > budget, first hit on
    # v7x's 64 MiB VMEM) split H over a second "arbitrary" grid axis with a
    # VMEM accumulator instead of forcing a 128-row tile.
    if m_rows <= rows:
        return m_rows                          # single exact-fit tile (always legal)
    return rows


def _make_kernel(k, h):
    def kernel(x_ref, w_ref, b_ref, o_ref):
        # x_ref: [tm, k*h] VMEM   w_ref: [1, k*h] VMEM (grid-resident)
        # b_ref: [1] SMEM         o_ref: [k, tm] VMEM (lane-dense rows)
        prod = x_ref[...] * w_ref[...]         # VPU broadcast-multiply
        bval = b_ref[0]
        for f in range(k):                     # static, tiny unroll (k <= 16)
            row = jnp.sum(prod[:, f * h:(f + 1) * h], axis=-1) + bval
            o_ref[f, :] = row.astype(o_ref.dtype)
    return kernel


@jax.jit
def masked_language_model_forward(x, weight, bias):
    """x: [B, S, H]; weight: [1, H] (torch nn.Linear layout); bias: [1]."""
    B, S, H = x.shape
    M = B * S

    # Fold k consecutive rows into the lane axis when H < 128 (lane density).
    if H < 128 and H >= 8 and 128 % H == 0 and M % (128 // H) == 0:
        k = 128 // H
    else:
        k = 1
    L = k * H
    Mk = M // k

    x2d = x.reshape(Mk, L)                            # pure reshape, no HBM copy
    w = jnp.tile(weight.reshape(1, H).astype(jnp.float32), (1, k))  # (1, L)
    b = bias.reshape(1).astype(jnp.float32)           # scalar -> SMEM

    vmem_cap = _vmem_capacity_bytes()
    tm = _pick_tile_rows(Mk, L, vmem_cap)
    grid = (pl.cdiv(Mk, tm),)                         # ragged last tile, no pad

    x_buf_bytes = 2 * _round_up(tm, 8) * _round_up(L, 128) * 4
    o_buf_bytes = 2 * 8 * _round_up(tm, 128) * 4
    vmem_limit = max((vmem_cap * 3) // 4, x_buf_bytes + o_buf_bytes + (2 << 20))
    vmem_limit = min(vmem_limit, vmem_cap - (4 << 20))

    out = pl.pallas_call(
        _make_kernel(k, H),
        out_shape=jax.ShapeDtypeStruct((k, Mk), jnp.float32),
        grid_spec=pltpu.PrefetchScalarGridSpec(
            num_scalar_prefetch=0,
            grid=grid,
            in_specs=[
                pl.BlockSpec((tm, L), lambda i: (i, 0)),             # x: tiled
                pl.BlockSpec((1, L), lambda i: (0, 0)),              # w: resident
                pl.BlockSpec(memory_space=pltpu.MemorySpace.SMEM),   # bias
            ],
            out_specs=pl.BlockSpec((k, tm), lambda i: (0, i)),       # lane-dense
        ),
        compiler_params=pltpu.CompilerParams(
            dimension_semantics=("parallel",),        # shard M tiles (v7x 2 TCs)
            vmem_limit_bytes=int(vmem_limit),
        ),
        cost_estimate=pl.CostEstimate(
            flops=2 * M * H,
            transcendentals=0,
            bytes_accessed=M * H * 4 + M * 4 + L * 4 + 4,
        ),
    )(x2d, w, b)

    # Un-fold: out[f, m'] is row m'*k + f of the flattened input.
    y = out.reshape(M) if k == 1 else out.T.reshape(M)
    # torch: self.linear(x).squeeze() -> [B, S, 1] -> squeeze all size-1 dims
    return y.reshape(B, S, 1).squeeze()


if __name__ == "__main__":
    B, S, H = 2, 8, 32

    key = jax.random.PRNGKey(0)
    kx, kw, kb = jax.random.split(key, 3)

    x = jax.random.normal(kx, (B, S, H), dtype=jnp.float32)
    # nn.Linear(hidden, 1): weight [1, hidden], bias [1]
    bound = 1.0 / (H ** 0.5)
    weight = jax.random.uniform(kw, (1, H), minval=-bound, maxval=bound,
                                dtype=jnp.float32)
    bias = jax.random.uniform(kb, (1,), minval=-bound, maxval=bound,
                              dtype=jnp.float32)

    y = masked_language_model_forward(x, weight, bias)
    y = jax.block_until_ready(y)

    # Reference check in plain JAX.
    ref = (x @ weight.T + bias).squeeze()
    assert y.shape == ref.shape, (y.shape, ref.shape)
    assert jnp.allclose(y, ref, atol=1e-5, rtol=1e-5)

    print("KERNEL_OK")
</pallas_src>

<mosaic_0001>
module attributes {stable_mosaic.version = 11 : i64} {
  func.func @kernel(%arg0: i32, %arg1: memref<4x128xf32, #tpu.memory_space<vmem>>, %arg2: memref<1x128xf32, #tpu.memory_space<vmem>>, %arg3: memref<1xf32, #tpu.memory_space<smem>>, %arg4: memref<4x4xf32, #tpu.memory_space<vmem>>) attributes {dimension_semantics = [#tpu.dimension_semantics<parallel>], iteration_bounds = array<i64: 1>, scalar_prefetch = 0 : i64, scratch_operands = 0 : i64, tpu.core_type = #tpu.core_type<tc>, window_params = [{transform_indices = @transform_0, window_bounds = array<i64: 4, 128>}, {pipeline_mode = #tpu.pipeline_mode<synchronous>, transform_indices = @transform_1, window_bounds = array<i64: 1, 128>}, {transform_indices = @transform_2, window_bounds = array<i64: 1>}, {transform_indices = @transform_3, window_bounds = array<i64: 4, 4>}]} {
    %c0 = arith.constant 0 : index
    %c0_0 = arith.constant 0 : index
    %0 = vector.load %arg1[%c0, %c0_0] : memref<4x128xf32, #tpu.memory_space<vmem>>, vector<4x128xf32>
    %c0_1 = arith.constant 0 : index
    %c0_2 = arith.constant 0 : index
    %1 = vector.load %arg2[%c0_1, %c0_2] : memref<1x128xf32, #tpu.memory_space<vmem>>, vector<1x128xf32>
    %2 = vector.broadcast %1 : vector<1x128xf32> to vector<4x128xf32>
    %3 = arith.mulf %0, %2 : vector<4x128xf32>
    %c0_3 = arith.constant 0 : index
    %4 = memref.load %arg3[%c0_3] : memref<1xf32, #tpu.memory_space<smem>>
    %5 = vector.extract_strided_slice %3 {offsets = [0, 0], sizes = [4, 32], strides = [1, 1]} : vector<4x128xf32> to vector<4x32xf32>
    %cst = arith.constant dense<0.000000e+00> : vector<4xf32>
    %6 = vector.multi_reduction <add>, %5, %cst [1] : vector<4x32xf32> to vector<4xf32>
    %7 = vector.broadcast %4 : f32 to vector<4xf32>
    %8 = arith.addf %6, %7 : vector<4xf32>
    %c0_4 = arith.constant 0 : index
    %c0_5 = arith.constant 0 : index
    %9 = vector.load %arg4[%c0_4, %c0_5] : memref<4x4xf32, #tpu.memory_space<vmem>>, vector<1x4xf32>
    %10 = vector.shape_cast %9 : vector<1x4xf32> to vector<4xf32>
    %11 = vector.shape_cast %8 : vector<4xf32> to vector<1x4xf32>
    tpu.vector_store %arg4[%c0_4, %c0_5], %11 {strides = array<i32>} : memref<4x4xf32, #tpu.memory_space<vmem>>, vector<1x4xf32>,
    %12 = vector.extract_strided_slice %3 {offsets = [0, 32], sizes = [4, 32], strides = [1, 1]} : vector<4x128xf32> to vector<4x32xf32>
    %cst_6 = arith.constant dense<0.000000e+00> : vector<4xf32>
    %13 = vector.multi_reduction <add>, %12, %cst_6 [1] : vector<4x32xf32> to vector<4xf32>
    %14 = vector.broadcast %4 : f32 to vector<4xf32>
    %15 = arith.addf %13, %14 : vector<4xf32>
    %c1 = arith.constant 1 : index
    %c0_7 = arith.constant 0 : index
    %16 = vector.load %arg4[%c1, %c0_7] : memref<4x4xf32, #tpu.memory_space<vmem>>, vector<1x4xf32>
    %17 = vector.shape_cast %16 : vector<1x4xf32> to vector<4xf32>
    %18 = vector.shape_cast %15 : vector<4xf32> to vector<1x4xf32>
    tpu.vector_store %arg4[%c1, %c0_7], %18 {strides = array<i32>} : memref<4x4xf32, #tpu.memory_space<vmem>>, vector<1x4xf32>,
    %19 = vector.extract_strided_slice %3 {offsets = [0, 64], sizes = [4, 32], strides = [1, 1]} : vector<4x128xf32> to vector<4x32xf32>
    %cst_8 = arith.constant dense<0.000000e+00> : vector<4xf32>
    %20 = vector.multi_reduction <add>, %19, %cst_8 [1] : vector<4x32xf32> to vector<4xf32>
    %21 = vector.broadcast %4 : f32 to vector<4xf32>
    %22 = arith.addf %20, %21 : vector<4xf32>
    %c2 = arith.constant 2 : index
    %c0_9 = arith.constant 0 : index
    %23 = vector.load %arg4[%c2, %c0_9] : memref<4x4xf32, #tpu.memory_space<vmem>>, vector<1x4xf32>
    %24 = vector.shape_cast %23 : vector<1x4xf32> to vector<4xf32>
    %25 = vector.shape_cast %22 : vector<4xf32> to vector<1x4xf32>
    tpu.vector_store %arg4[%c2, %c0_9], %25 {strides = array<i32>} : memref<4x4xf32, #tpu.memory_space<vmem>>, vector<1x4xf32>,
    %26 = vector.extract_strided_slice %3 {offsets = [0, 96], sizes = [4, 32], strides = [1, 1]} : vector<4x128xf32> to vector<4x32xf32>
    %cst_10 = arith.constant dense<0.000000e+00> : vector<4xf32>
    %27 = vector.multi_reduction <add>, %26, %cst_10 [1] : vector<4x32xf32> to vector<4xf32>
    %28 = vector.broadcast %4 : f32 to vector<4xf32>
    %29 = arith.addf %27, %28 : vector<4xf32>
    %c3 = arith.constant 3 : index
    %c0_11 = arith.constant 0 : index
    %30 = vector.load %arg4[%c3, %c0_11] : memref<4x4xf32, #tpu.memory_space<vmem>>, vector<1x4xf32>
    %31 = vector.shape_cast %30 : vector<1x4xf32> to vector<4xf32>
    %32 = vector.shape_cast %29 : vector<4xf32> to vector<1x4xf32>
    tpu.vector_store %arg4[%c3, %c0_11], %32 {strides = array<i32>} : memref<4x4xf32, #tpu.memory_space<vmem>>, vector<1x4xf32>,
    return
  }
  func.func @transform_0(%arg0: i32) -> (i32, i32) {
    %c0_i32 = arith.constant 0 : i32
    %c0_i32_0 = arith.constant 0 : i32
    return %arg0, %c0_i32 : i32, i32
  }
  func.func @transform_1(%arg0: i32) -> (i32, i32) {
    %c0_i32 = arith.constant 0 : i32
    %c0_i32_0 = arith.constant 0 : i32
    %c0_i32_1 = arith.constant 0 : i32
    return %c0_i32, %c0_i32_0 : i32, i32
  }
  func.func @transform_2(%arg0: i32) -> i32 {
    %c0_i32 = arith.constant 0 : i32
    %c0_i32_0 = arith.constant 0 : i32
    return %c0_i32 : i32
  }
  func.func @transform_3(%arg0: i32) -> (i32, i32) {
    %c0_i32 = arith.constant 0 : i32
    %c0_i32_0 = arith.constant 0 : i32
    return %c0_i32, %arg0 : i32, i32
  }
}

</mosaic_0001>

<bundles_post_ra>
// kernel: masked_language_model_forward.1
= control target key start
LH: loop header
LB: loop body
LE: loop exit
PB: predicated region body
PF: predicated region fallthrough
CT: control target
= control target key end

     0   :  { %s92_s16 = smov 96   ;;  %s93_s17 = smov 32   ;;  %vm25_vm0 = vcmask 257024   ;;  %v32_v10 = vlaneseq  ;;  %vm39_vm1 = vcmask 24576   ;;  %s136_s0 = inlined_call_operand.vmem [shape: f32[4,128], index: 0, kind: input, shape index: {}]   ;;  %s137_s1 = inlined_call_operand.vmem [shape: f32[1,128], index: 1, kind: input, shape index: {}]   ;;  %s138_s2 = inlined_call_operand.<no memory space> [shape: f32[1], index: 2, kind: input, shape index: {}]   ;;  %s139_s3 = inlined_call_operand.vmem [shape: f32[4,4], index: 3, kind: output, shape index: {}]  }
   0x1   :  { %v15_v0 = vld [vmem:[%s136_s0] sm:$0xf]  ;;  %s94_s18 = smov 64   ;;  %v29_v13 = vstv %s138_s2 }
   0x2   :  { %v88_v1 = vld [vmem:[%s137_s1] ss:$0 sm:$0xff]  ;;  %v33_v11 = vand.u32 127, %v32_v10  ;;  %v35_v12 = vshrl.u32 %v32_v10, 7 }
   0x3   :  { %v23_v2 = vmul.f32 %v88_v1, %v15_v0 }
   0x4   :  { %v36_v14 = vsub.s32 %v33_v11, %v35_v12 }
   0x5   :  { %42 = vrot.lane.b32.xlu0 %v23_v2, %s92_s16  ;;  %70 = vrot.lane.b32.xlu1 %v23_v2, %s93_s17  ;;  %v26_v3 = vsel %vm25_vm0, %v23_v2, 0.0 }
   0x9   :  { %56 = vrot.lane.b32.xlu0 %v23_v2, %s94_s18 }
  0x29   :  { %27 = vadd.xlane.f32.xlu1 %v26_v3 }
  0x77   :  { %v43_v4 = vpop.permute.xlu0 %42  ;;  %v71_v5 = vpop.permute.xlu1 %70 }
  0x78   :  { %v45_v6 = vsel %vm25_vm0, %v43_v4, 0.0  ;;  %v73_v7 = vsel %vm25_vm0, %v71_v5, 0.0 }
  0x79   :  { %46 = vadd.xlane.f32.xlu0 %v45_v6  ;;  %74 = vadd.xlane.f32.xlu1 %v73_v7 }
  0x7b   :  { %v57_v8 = vpop.permute.xlu0 %56 }
  0x7c   :  { %v59_v9 = vsel %vm25_vm0, %v57_v8, 0.0 }
  0x7d   :  { %60 = vadd.xlane.f32.xlu0 %v59_v9 }
  0xb6   :  { %v28_v15 = vpop.xlane.xlu1 %27 }
  0xb7   :  { %v30_v16 = vadd.f32 %v29_v13, %v28_v15 }
  0xb9   :  { %v37_v17 = vrot.slane %v30_v16, %v36_v14 }
  0xbb   :  { %40 = vst.msk [vmem:[%s139_s3] sm:$0x1] %vm39_vm1, %v37_v17 }
 0x106   :  { %v47_v18 = vpop.xlane.xlu0 %46  ;;  %v75_v19 = vpop.xlane.xlu1 %74 }
 0x107   :  { %v48_v20 = vadd.f32 %v47_v18, %v29_v13  ;;  %v76_v21 = vadd.f32 %v75_v19, %v29_v13 }
 0x109   :  { %v53_v22 = vrot.slane %v48_v20, %v36_v14  ;;  %v81_v23 = vrot.slane %v76_v21, %v36_v14 }
 0x10a   :  { %v61_v24 = vpop.xlane.xlu0 %60 }
 0x10b   :  { %55 = vst.msk [vmem:[%s139_s3 + $0x1] sm:$0x1] %vm39_vm1, %v53_v22  ;;  %v62_v25 = vadd.f32 %v61_v24, %v29_v13  ;;  %83 = vst.msk [vmem:[%s139_s3 + $0x3] sm:$0x1] %vm39_vm1, %v81_v23 }
 0x10d   :  { %v67_v26 = vrot.slane %v62_v25, %v36_v14 }
 0x10f   :  { %69 = vst.msk [vmem:[%s139_s3 + $0x2] sm:$0x1] %vm39_vm1, %v67_v26 }

</bundles_post_ra>
